<compile_context>
chip_gen: v7x
topology: tpu7x:2x2x1
jax: 0.10.0
libtpu: 0.0.40
codegen_flags: <defaults>
</compile_context>

<pallas_src>
import functools

import jax
import jax.numpy as jnp
import numpy as np
from jax.experimental import pallas as pl
from jax.experimental.pallas import tpu as pltpu


def _round_up(x, m):
    return ((x + m - 1) // m) * m


# ---------------------------------------------------------------------------
# Kernel 1a: target-node projection (+ half-score via a folded weight column)
# ---------------------------------------------------------------------------
def tgt_project_kernel(x_ref, w_ref, wb_ref, h_ref, score_ref, *, score_col):
    # MXU matmul in f32 (Fin is small; f32 keeps the scores bit-accurate for tanh).
    h = jnp.dot(x_ref[...], w_ref[...],
                preferred_element_type=jnp.float32) + wb_ref[...]
    h_ref[...] = h.astype(h_ref.dtype)                 # bf16 MXU feed for kernel 2
    # aw_tgt (and all constant logit terms) are folded into column `score_col`
    # of the augmented weight, so the half-score is just a column slice.
    score_ref[...] = h[:, score_col:score_col + 1]


def _project_target(x_p, w_aug, wb_aug, row_tile, score_col):
    n_p, fin_p = x_p.shape
    h_p = w_aug.shape[1]
    kernel = functools.partial(tgt_project_kernel, score_col=score_col)
    return pl.pallas_call(
        kernel,
        out_shape=(jax.ShapeDtypeStruct((n_p, h_p), jnp.bfloat16),
                   jax.ShapeDtypeStruct((n_p, 1), jnp.float32)),
        grid=(n_p // row_tile,),
        in_specs=[
            pl.BlockSpec((row_tile, fin_p), lambda i: (i, 0)),
            pl.BlockSpec((fin_p, h_p), lambda i: (0, 0)),
            pl.BlockSpec((1, h_p), lambda i: (0, 0)),
        ],
        out_specs=(pl.BlockSpec((row_tile, h_p), lambda i: (i, 0)),
                   pl.BlockSpec((row_tile, 1), lambda i: (i, 0))),
        compiler_params=pltpu.CompilerParams(
            dimension_semantics=("parallel",)),
    )(x_p, w_aug, wb_aug)


# ---------------------------------------------------------------------------
# Kernel 1b: source-node half-score only (no dead src_h writeback)
# ---------------------------------------------------------------------------
def src_score_kernel(x_ref, wv_ref, score_ref):
    # s_score = src_x @ (W @ aw_src); all constant bias terms are folded into the
    # target-side score.  O(Ns*Fin) VPU multiply + row reduce -- negligible.
    score_ref[...] = jnp.sum(x_ref[...] * wv_ref[...], axis=-1, keepdims=True)


def _source_score(x_p, wv_row, row_tile):
    n_p, fin_p = x_p.shape
    return pl.pallas_call(
        src_score_kernel,
        out_shape=jax.ShapeDtypeStruct((n_p, 1), jnp.float32),
        grid=(n_p // row_tile,),
        in_specs=[
            pl.BlockSpec((row_tile, fin_p), lambda i: (i, 0)),
            pl.BlockSpec((1, fin_p), lambda i: (0, 0)),
        ],
        out_specs=pl.BlockSpec((row_tile, 1), lambda i: (i, 0)),
        compiler_params=pltpu.CompilerParams(
            dimension_semantics=("parallel",)),
    )(x_p, wv_row)


# ---------------------------------------------------------------------------
# Kernel 2: tiled masked softmax + aggregation  h' = softmax(mask*tanh(...)) @ tgt_h + bias
# ---------------------------------------------------------------------------
def gat_attn_kernel(occ_ref, s_score_ref, t_score_ref, tgt_h_ref, mask_ref,
                    bias_ref, out_ref, acc_sc, *, ones_col):
    i = pl.program_id(0)
    j = pl.program_id(1)
    nj = pl.num_programs(1)

    @pl.when(j == 0)
    def _():
        acc_sc[...] = jnp.zeros_like(acc_sc)

    # Block-sparse skip: an empty (i, j) mask tile contributes nothing (all p==0),
    # so only the init / epilogue stay unconditional.
    @pl.when(occ_ref[i * nj + j] != 0)
    def _():
        # tanh bounds the logits in [-1, 1] -> exp never overflows -> no online
        # max, no rescales, no masking selects.  Transcendentals in bf16
        # (2x EUP rate on v6e/v7x); accumulation stays in f32.
        logits = (s_score_ref[...] + t_score_ref[...]).astype(jnp.bfloat16)
        p = jnp.exp(jnp.tanh(logits)) * mask_ref[...].astype(jnp.bfloat16)
        # Aggregation on the MXU with f32 accumulation.  The all-ones padded
        # column of tgt_h makes acc[:, ones_col] the softmax denominator for free.
        acc_sc[...] += jnp.dot(p, tgt_h_ref[...],
                               preferred_element_type=jnp.float32)

    @pl.when(j == nj - 1)
    def _():
        acc = acc_sc[...]
        denom = acc[:, ones_col:ones_col + 1]
        inv = 1.0 / jnp.where(denom > 0.0, denom, 1.0)   # exact; once per row tile
        out_ref[...] = (acc * inv + bias_ref[...]).astype(out_ref.dtype)


def _attention(occ, s_score, t_score_row, tgt_h_bf16, mask_i8, bias_p,
               tm, tn, ones_col):
    ns_p = s_score.shape[0]
    nt_p, h_p = tgt_h_bf16.shape
    n_i = ns_p // tm
    n_j = nt_p // tn

    # VMEM budget from the actual footprint (double-buffered blocks + scratch),
    # with headroom; narrow (.,1)/(1,.) blocks are lane/sublane padded.
    vmem_bytes = 2 * (tm * 128 * 4         # s_score (lane-padded)
                      + 8 * tn * 4         # t_score (sublane-padded)
                      + tn * h_p * 2       # tgt_h (bf16)
                      + tm * tn * 1        # edge mask (int8)
                      + 8 * h_p * 4        # bias
                      + tm * h_p * 4)      # out
    vmem_bytes += tm * h_p * 4             # accumulator scratch
    vmem_limit = int(min(64 << 20, max(16 << 20, 1.5 * vmem_bytes)))

    kernel = functools.partial(gat_attn_kernel, ones_col=ones_col)
    return pl.pallas_call(
        kernel,
        out_shape=jax.ShapeDtypeStruct((ns_p, h_p), jnp.float32),
        grid_spec=pltpu.PrefetchScalarGridSpec(
            num_scalar_prefetch=1,                       # tile-occupancy table (SMEM)
            grid=(n_i, n_j),
            in_specs=[
                pl.BlockSpec((tm, 1), lambda i, j, occ: (i, 0)),     # s_score
                pl.BlockSpec((1, tn), lambda i, j, occ: (0, j)),     # t_score (+consts)
                pl.BlockSpec((tn, h_p), lambda i, j, occ: (j, 0)),   # tgt_h (bf16)
                pl.BlockSpec((tm, tn), lambda i, j, occ: (i, j)),    # edge mask (int8)
                pl.BlockSpec((1, h_p), lambda i, j, occ: (0, 0)),    # GATConv bias
            ],
            out_specs=pl.BlockSpec((tm, h_p), lambda i, j, occ: (i, 0)),
            scratch_shapes=[pltpu.VMEM((tm, h_p), jnp.float32)],     # h' accumulator
        ),
        compiler_params=pltpu.CompilerParams(
            dimension_semantics=("parallel", "arbitrary"),
            vmem_limit_bytes=vmem_limit),
    )(occ, s_score, t_score_row, tgt_h_bf16, mask_i8, bias_p)


# ---------------------------------------------------------------------------
# Wrapper: padding / parameter plumbing (cheap XLA ops), then the kernels.
# ---------------------------------------------------------------------------
def gat_conv(src_x, tgt_x, edge_mask, params, *, tm=None, tn=None):
    ns, fin = src_x.shape
    nt = tgt_x.shape[0]
    hid = params["w"].shape[1]

    fin_p = _round_up(fin, 128)
    h_p = _round_up(hid + 2, 128)     # reserve 2 padded cols: score + ones/denominator
    score_col = hid
    ones_col = hid + 1

    # Tile selection: large tiles (fewer grid steps, bigger-K MXU matmul, fewer
    # tgt_h re-reads) while keeping >= 2 row tiles when possible so both v7x
    # TensorCores get work on the "parallel" Ns axis.
    if tm is None:
        tm = min(512, _round_up(ns, 32))              # int8 mask: multiple of 32
        if ns > 32 and _round_up(ns, 32) <= tm:       # would be a single row tile
            tm = _round_up((ns + 1) // 2, 32)
    if tn is None:
        tn = min(1024, _round_up(nt, 128))            # lane-dense
    ns_p = _round_up(ns, tm)
    nt_p = _round_up(nt, tn)

    f32 = jnp.float32
    w = params["w"].astype(f32)
    wb = params["wb"].reshape(1, hid).astype(f32)
    aw_s = params["aw_src"].reshape(hid, 1).astype(f32)
    aw_t = params["aw_tgt"].reshape(hid, 1).astype(f32)
    ab = params["ab"].reshape(()).astype(f32)
    bias = params["bias"].reshape(1, hid).astype(f32)

    # Augmented target weight: cols[:hid]=W, col[score_col]=W@aw_tgt, col[ones_col]=0.
    # All constant logit terms (wb@aw_tgt + wb@aw_src + ab) fold into the score
    # column's bias; the ones column bias is 1.0 (denominator trick).
    w_aug = jnp.zeros((fin_p, h_p), f32)
    w_aug = w_aug.at[:fin, :hid].set(w)
    w_aug = w_aug.at[:fin, score_col:score_col + 1].set(w @ aw_t)
    wb_aug = jnp.zeros((1, h_p), f32)
    wb_aug = wb_aug.at[:, :hid].set(wb)
    wb_aug = wb_aug.at[0, score_col].set((wb @ aw_t)[0, 0] + (wb @ aw_s)[0, 0] + ab)
    wb_aug = wb_aug.at[0, ones_col].set(1.0)

    # Source-side score vector (bias terms already folded into the target score).
    wv_src = jnp.zeros((1, fin_p), f32).at[0, :fin].set((w @ aw_s)[:, 0])

    bias_p = jnp.zeros((1, h_p), f32).at[:, :hid].set(bias)

    src_x_p = jnp.zeros((ns_p, fin_p), f32).at[:ns, :fin].set(src_x.astype(f32))
    tgt_x_p = jnp.zeros((nt_p, fin_p), f32).at[:nt, :fin].set(tgt_x.astype(f32))

    # int8 edge mask (padded rows/cols carry no edges) + per-tile occupancy table
    # for the block-sparse skip (scalar prefetch, SMEM).
    mask_bool = jnp.zeros((ns_p, nt_p), jnp.bool_).at[:ns, :nt].set(edge_mask > 0)
    mask_i8 = mask_bool.astype(jnp.int8)
    occ = jnp.any(mask_bool.reshape(ns_p // tm, tm, nt_p // tn, tn),
                  axis=(1, 3)).astype(jnp.int32).reshape(-1)

    # Projections hoisted out of the O(Ns*Nt) attention loop.
    tgt_h_bf16, t_score = _project_target(tgt_x_p, w_aug, wb_aug, tn, score_col)
    s_score = _source_score(src_x_p, wv_src, tm)
    t_score_row = t_score.reshape(1, nt_p)           # Nt on the lane axis

    out_p = _attention(occ, s_score, t_score_row, tgt_h_bf16, mask_i8, bias_p,
                       tm, tn, ones_col)
    return out_p[:ns, :hid]


# ---------------------------------------------------------------------------
# Pure-JAX f32 reference (mirrors the torch module's sparse-softmax forward).
# ---------------------------------------------------------------------------
def gat_conv_reference(src_x, tgt_x, edge_mask, params):
    src_h = src_x @ params["w"] + params["wb"]
    tgt_h = tgt_x @ params["w"] + params["wb"]
    logits = jnp.tanh(src_h @ params["aw_src"]
                      + (tgt_h @ params["aw_tgt"]).T + params["ab"][0, 0])
    masked = jnp.where(edge_mask > 0, logits, -1e30)
    m = jnp.max(masked, axis=1, keepdims=True)
    p = jnp.where(edge_mask > 0, jnp.exp(masked - m), 0.0)
    denom = jnp.sum(p, axis=1, keepdims=True)
    attn = p / jnp.where(denom > 0, denom, 1.0)
    return attn @ tgt_h + params["bias"]


if __name__ == "__main__":
    in_features = 16
    hid_features = 32
    n_src = 8
    n_tgt = 8

    key = jax.random.PRNGKey(0)
    k_src, k_tgt, k_w, k_wb, k_a, k_ab = jax.random.split(key, 6)

    source_h = jax.random.normal(k_src, (n_src, in_features), jnp.float32)
    target_h = jax.random.normal(k_tgt, (n_tgt, in_features), jnp.float32)

    # deterministic edge list: each source node connects to 3 target nodes
    src_idx = np.repeat(np.arange(n_src), 3)
    tgt_idx = np.concatenate([(np.arange(3) + i) % n_tgt for i in range(n_src)])
    edge_mask = jnp.zeros((n_src, n_tgt), jnp.float32).at[
        jnp.asarray(src_idx), jnp.asarray(tgt_idx)].set(1.0)

    # deterministic parameters (nn.Linear-style uniform init; GAT bias = 0)
    bound_w = 1.0 / np.sqrt(in_features)
    bound_a = 1.0 / np.sqrt(2 * hid_features)
    w = jax.random.uniform(k_w, (in_features, hid_features), jnp.float32,
                           -bound_w, bound_w)               # feat_linear.weight.T
    wb = jax.random.uniform(k_wb, (1, hid_features), jnp.float32,
                            -bound_w, bound_w)              # feat_linear.bias
    att_w = jax.random.uniform(k_a, (2 * hid_features, 1), jnp.float32,
                               -bound_a, bound_a)           # att.weight.T
    ab = jax.random.uniform(k_ab, (1, 1), jnp.float32, -bound_a, bound_a)
    params = {
        "w": w,
        "wb": wb,
        "aw_src": att_w[:hid_features],
        "aw_tgt": att_w[hid_features:],
        "ab": ab,
        "bias": jnp.zeros((1, hid_features), jnp.float32),  # reset_parameters()
    }

    out = gat_conv(source_h, target_h, edge_mask, params)
    out = jax.block_until_ready(out)

    ref = gat_conv_reference(source_h, target_h, edge_mask, params)
    # tolerance accounts for bf16 transcendentals and bf16 MXU inputs (p, tgt_h)
    np.testing.assert_allclose(np.asarray(out), np.asarray(ref),
                               rtol=2e-2, atol=2e-2)
    print("KERNEL_OK")
</pallas_src>

<mosaic_0001>
module attributes {stable_mosaic.version = 11 : i64} {
  func.func @tgt_project_kernel(%arg0: i32, %arg1: memref<128x128xf32, #tpu.memory_space<vmem>>, %arg2: memref<128x128xf32, #tpu.memory_space<vmem>>, %arg3: memref<1x128xf32, #tpu.memory_space<vmem>>, %arg4: memref<128x128xbf16, #tpu.memory_space<vmem>>, %arg5: memref<128x1xf32, #tpu.memory_space<vmem>>) attributes {dimension_semantics = [#tpu.dimension_semantics<parallel>], iteration_bounds = array<i64: 1>, scalar_prefetch = 0 : i64, scratch_operands = 0 : i64, tpu.core_type = #tpu.core_type<tc>, window_params = [{transform_indices = @transform_0, window_bounds = array<i64: 128, 128>}, {pipeline_mode = #tpu.pipeline_mode<synchronous>, transform_indices = @transform_1, window_bounds = array<i64: 128, 128>}, {pipeline_mode = #tpu.pipeline_mode<synchronous>, transform_indices = @transform_2, window_bounds = array<i64: 1, 128>}, {transform_indices = @transform_3, window_bounds = array<i64: 128, 128>}, {transform_indices = @transform_4, window_bounds = array<i64: 128, 1>}]} {
    %c0 = arith.constant 0 : index
    %c0_0 = arith.constant 0 : index
    %0 = vector.load %arg1[%c0, %c0_0] : memref<128x128xf32, #tpu.memory_space<vmem>>, vector<128x128xf32>
    %c0_1 = arith.constant 0 : index
    %c0_2 = arith.constant 0 : index
    %1 = vector.load %arg2[%c0_1, %c0_2] : memref<128x128xf32, #tpu.memory_space<vmem>>, vector<128x128xf32>
    %cst = arith.constant dense<0.000000e+00> : vector<128x128xf32>
    %2 = tpu.matmul %0, %1, %cst {dimension_numbers = #tpu.dot_dimension_numbers<[1], [0], [0], [1], [0, 0, 1, 1], [], []>} : vector<128x128xf32>, vector<128x128xf32>, vector<128x128xf32> -> vector<128x128xf32>
    %c0_3 = arith.constant 0 : index
    %c0_4 = arith.constant 0 : index
    %3 = vector.load %arg3[%c0_3, %c0_4] : memref<1x128xf32, #tpu.memory_space<vmem>>, vector<1x128xf32>
    %4 = vector.broadcast %3 : vector<1x128xf32> to vector<128x128xf32>
    %5 = arith.addf %2, %4 : vector<128x128xf32>
    %6 = arith.truncf %5 : vector<128x128xf32> to vector<128x128xbf16>
    %c0_5 = arith.constant 0 : index
    %c0_6 = arith.constant 0 : index
    %7 = vector.load %arg4[%c0_5, %c0_6] : memref<128x128xbf16, #tpu.memory_space<vmem>>, vector<128x128xbf16>
    tpu.vector_store %arg4[%c0_5, %c0_6], %6 {strides = array<i32>} : memref<128x128xbf16, #tpu.memory_space<vmem>>, vector<128x128xbf16>,
    %8 = vector.extract_strided_slice %5 {offsets = [0, 32], sizes = [128, 1], strides = [1, 1]} : vector<128x128xf32> to vector<128x1xf32>
    %c0_7 = arith.constant 0 : index
    %c0_8 = arith.constant 0 : index
    %9 = vector.load %arg5[%c0_7, %c0_8] : memref<128x1xf32, #tpu.memory_space<vmem>>, vector<128x1xf32>
    tpu.vector_store %arg5[%c0_7, %c0_8], %8 {strides = array<i32>} : memref<128x1xf32, #tpu.memory_space<vmem>>, vector<128x1xf32>,
    return
  }
  func.func @transform_0(%arg0: i32) -> (i32, i32) {
    %c0_i32 = arith.constant 0 : i32
    %c0_i32_0 = arith.constant 0 : i32
    return %arg0, %c0_i32 : i32, i32
  }
  func.func @transform_1(%arg0: i32) -> (i32, i32) {
    %c0_i32 = arith.constant 0 : i32
    %c0_i32_0 = arith.constant 0 : i32
    %c0_i32_1 = arith.constant 0 : i32
    return %c0_i32, %c0_i32_0 : i32, i32
  }
  func.func @transform_2(%arg0: i32) -> (i32, i32) {
    %c0_i32 = arith.constant 0 : i32
    %c0_i32_0 = arith.constant 0 : i32
    %c0_i32_1 = arith.constant 0 : i32
    return %c0_i32, %c0_i32_0 : i32, i32
  }
  func.func @transform_3(%arg0: i32) -> (i32, i32) {
    %c0_i32 = arith.constant 0 : i32
    %c0_i32_0 = arith.constant 0 : i32
    return %arg0, %c0_i32 : i32, i32
  }
  func.func @transform_4(%arg0: i32) -> (i32, i32) {
    %c0_i32 = arith.constant 0 : i32
    %c0_i32_0 = arith.constant 0 : i32
    return %arg0, %c0_i32 : i32, i32
  }
}

</mosaic_0001>

<bundles_post_ra>
// kernel: tpu_custom_call.1
= control target key start
LH: loop header
LB: loop body
LE: loop exit
PB: predicated region body
PF: predicated region fallthrough
CT: control target
= control target key end

     0   :  { %10 = vsyncpa [#allocation3], 0  ;;  %s860_s0 = inlined_call_operand.hbm [shape: f32[128,128], index: 0, kind: input, shape index: {}]   ;;  %s861_s1 = inlined_call_operand.hbm [shape: f32[128,128], index: 1, kind: input, shape index: {}]   ;;  %s862_s2 = inlined_call_operand.vmem [shape: f32[1,128], index: 2, kind: input, shape index: {}]   ;;  %s863_s3 = inlined_call_operand.hbm [shape: bf16[128,128], index: 3, kind: output, shape index: {0}]   ;;  %s864_s4 = inlined_call_operand.vmem [shape: f32[128,1], index: 4, kind: output, shape index: {1}]  }
   0x1   :  { %11 = vsyncpa [#allocation6], 0 }
   0x2   :  { %12 = vsyncpa [#allocation4], 0  ;;  %s708_s15 = smov [#allocation2]   ;;  %s636_s19 = scalar_lea.hbm %s860_s0, 2048 }
   0x3   :  { %s18_s16 = sshll.u32 %s708_s15, 4  ;;  %p637_p0 = scmp.ne.s32.totalorder %s860_s0, %s636_s19  ;;  %s19_s16 = int_to_ptr.vmem [resolvable:$true] %s18_s16 }
   0x4   :  { %p640_p1 = scmp.lt.u32.totalorder %s636_s19, %s860_s0 }
   0x6   :  { %p642_p2 = pnand %p640_p1, %p637_p0 }
   0x8   :  { %645 = shalt.err (!%p642_p2)
}
   0x9   :  { %s646_s24 = scalar_lea.vmem %s19_s16, 2048  ;;  %p651_p4 = scmp.lt.s32.totalorder %s19_s16, %s19_s16 }
   0xa   :  { %p647_p3 = scmp.ne.s32.totalorder %s19_s16, %s646_s24  ;;  %p652_p5 = scmp.lt.s32.totalorder %s646_s24, %s646_s24 }
   0xc   :  { %p653_p6 = por %p652_p5, %p651_p4 }
   0xe   :  { %p654_p7 = pnand %p653_p6, %p647_p3 }
  0x10   :  { %657 = shalt.err (!%p654_p7)
}
  0x11   :  { %s709_s25 = smov 128   ;;  %s710_s26 = smov 8  }
  0x12   :  { %24 = dma.hbm_to_vmem [thread:$0]  %s860_s0, 2048, %s19_s16, [#allocation3], %s709_s25, %s709_s25, %s710_s26  }
  0x13   :  { %s711_s29 = smov [#allocation5]   ;;  %s658_s7 = scalar_lea.hbm %s861_s1, 2048 }
  0x14   :  { %s30_s30 = sshll.u32 %s711_s29, 4  ;;  %p659_p8 = scmp.ne.s32.totalorder %s861_s1, %s658_s7  ;;  %s31_s30 = int_to_ptr.vmem [resolvable:$true] %s30_s30 }
  0x15   :  { %p662_p9 = scmp.lt.u32.totalorder %s658_s7, %s861_s1 }
  0x17   :  { %p664_p10 = pnand %p662_p9, %p659_p8 }
  0x19   :  { %667 = shalt.err (!%p664_p10)
}
  0x1a   :  { %s668_s12 = scalar_lea.vmem %s31_s30, 2048  ;;  %p673_p12 = scmp.lt.s32.totalorder %s31_s30, %s31_s30 }
  0x1b   :  { %p669_p11 = scmp.ne.s32.totalorder %s31_s30, %s668_s12  ;;  %p674_p13 = scmp.lt.s32.totalorder %s668_s12, %s668_s12 }
  0x1d   :  { %p675_p0 = por %p674_p13, %p673_p12 }
  0x1f   :  { %p676_p1 = pnand %p675_p0, %p669_p11 }
  0x21   :  { %679 = shalt.err (!%p676_p1)
}
  0x22   :  { %36 = dma.hbm_to_vmem [thread:$0]  %s861_s1, 2048, %s31_s30, [#allocation6], %s709_s25, %s709_s25, %s710_s26  }
  0x23   :  { %702 = dma.done.wait [#allocation3], 2048  }
  0x24   :  { %703 = vsyncadd [#allocation3], 4294965248 }
  0x25   :  { %704 = dma.done.wait [#allocation6], 2048  }
  0x26   :  { %705 = vsyncadd [#allocation6], 4294965248  ;;  %v61_v0 = vld [vmem:[#allocation5] sm:$0xff]  ;;  %v62_v1 = vld [vmem:[#allocation5 + $0x8] sm:$0xff]  ;;  %s712_s15 = smov 96  }
  0x27   :  { %v63_v2 = vld [vmem:[#allocation5 + $0x10] sm:$0xff]  ;;  %v580_v3 = vpack.c.bf16 %v62_v1, %v61_v0  ;;  %v64_v4 = vld [vmem:[#allocation5 + $0x18] sm:$0xff]  ;;  %v65_v6 = vld [vmem:[#allocation5 + $0x20] sm:$0xff] }
  0x28   :  { %v584_v5 = vpack.c.bf16 %v64_v4, %v63_v2  ;;  %v66_v7 = vld [vmem:[#allocation5 + $0x28] sm:$0xff]  ;;  %v45_v9 = vld [vmem:[#allocation2] sm:$0xff]  ;;  %v67_v11 = vld [vmem:[#allocation5 + $0x30] sm:$0xff] }
  0x29   :  { %581 = vmatprep.subr.bf16.mxu0 %v580_v3  ;;  %612 = vmatprep.subr.bf16.mxu1 %v580_v3  ;;  %v588_v8 = vpack.c.bf16 %v66_v7, %v65_v6  ;;  %v53_v10 = vld [vmem:[#allocation2 + $0x40] sm:$0xff]  ;;  %v68_v12 = vld [vmem:[#allocation5 + $0x38] sm:$0xff]  ;;  %v70_v15 = vld [vmem:[#allocation5 + $0x48] sm:$0xff] }
  0x2a   :  { %583 = vmatpush3.bf16.msra.mxu0 %v580_v3  ;;  %620 = vmatpush3.bf16.msra.mxu1 %v580_v3  ;;  %v592_v13 = vpack.c.bf16 %v68_v12, %v67_v11  ;;  %v69_v14 = vld [vmem:[#allocation5 + $0x40] sm:$0xff]  ;;  %v71_v17 = vld [vmem:[#allocation5 + $0x50] sm:$0xff]  ;;  %v72_v18 = vld [vmem:[#allocation5 + $0x58] sm:$0xff] }
  0x2b   :  { %585 = vmatprep.subr.bf16.mxu0 %v584_v5  ;;  %613 = vmatprep.subr.bf16.mxu1 %v584_v5  ;;  %v596_v16 = vpack.c.bf16 %v70_v15, %v69_v14  ;;  %v600_v19 = vpack.c.bf16 %v72_v18, %v71_v17  ;;  %v73_v20 = vld [vmem:[#allocation5 + $0x60] sm:$0xff]  ;;  %v74_v21 = vld [vmem:[#allocation5 + $0x68] sm:$0xff]  ;;  %v75_v23 = vld [vmem:[#allocation5 + $0x70] sm:$0xff] }
  0x2c   :  { %556 = vmatprep.mubr.f32.mxu0 %v45_v9  ;;  %568 = vmatprep.mubr.f32.mxu1 %v53_v10  ;;  %v604_v22 = vpack.c.bf16 %v74_v21, %v73_v20  ;;  %v76_v24 = vld [vmem:[#allocation5 + $0x78] sm:$0xff]  ;;  %v46_v26 = vld [vmem:[#allocation2 + $0x8] sm:$0xff]  ;;  %v47_v28 = vld [vmem:[#allocation2 + $0x10] sm:$0xff] }
  0x2d   :  { %v608_v25 = vpack.c.bf16 %v76_v24, %v75_v23  ;;  %v54_v27 = vld [vmem:[#allocation2 + $0x48] sm:$0xff]  ;;  %v55_v29 = vld [vmem:[#allocation2 + $0x50] sm:$0xff]  ;;  %v48_v30 = vld [vmem:[#allocation2 + $0x18] sm:$0xff] }
  0x2e   :  { %587 = vmatpush3.bf16.msra.mxu0 %v584_v5  ;;  %621 = vmatpush3.bf16.msra.mxu1 %v584_v5  ;;  %v56_v31 = vld [vmem:[#allocation2 + $0x58] sm:$0xff]  ;;  %v49_v32 = vld [vmem:[#allocation2 + $0x20] sm:$0xff]  ;;  %v50_v34 = vld [vmem:[#allocation2 + $0x28] sm:$0xff] }
  0x2f   :  { %589 = vmatprep.subr.bf16.mxu0 %v588_v8  ;;  %614 = vmatprep.subr.bf16.mxu1 %v588_v8  ;;  %v57_v33 = vld [vmem:[#allocation2 + $0x60] sm:$0xff]  ;;  %v58_v35 = vld [vmem:[#allocation2 + $0x68] sm:$0xff]  ;;  %v51_v36 = vld [vmem:[#allocation2 + $0x30] sm:$0xff] }
  0x30   :  { %v59_v37 = vld [vmem:[#allocation2 + $0x70] sm:$0xff]  ;;  %v52_v38 = vld [vmem:[#allocation2 + $0x38] sm:$0xff]  ;;  %v412_v40 = vld [vmem:[%s862_s2] ss:$0 sm:$0xff]  ;;  %s713_s2 = smov [#allocation7]  }
  0x31   :  { %v60_v39 = vld [vmem:[#allocation2 + $0x78] sm:$0xff]  ;;  %s395_s16 = sshll.u32 %s713_s2, 4  ;;  %s396_s16 = int_to_ptr.vmem [resolvable:$true] %s395_s16 }
  0x32   :  { %591 = vmatpush3.bf16.msra.mxu0 %v588_v8  ;;  %622 = vmatpush3.bf16.msra.mxu1 %v588_v8  ;;  %s680_s17 = scalar_lea.vmem %s396_s16, 1024  ;;  %p685_p3 = scmp.lt.s32.totalorder %s396_s16, %s396_s16 }
  0x33   :  { %593 = vmatprep.subr.bf16.mxu0 %v592_v13  ;;  %615 = vmatprep.subr.bf16.mxu1 %v592_v13  ;;  %p681_p2 = scmp.ne.s32.totalorder %s396_s16, %s680_s17  ;;  %p686_p4 = scmp.lt.s32.totalorder %s680_s17, %s680_s17 }
  0x35   :  { %p687_p5 = por %p686_p4, %p685_p3 }
  0x36   :  { %595 = vmatpush3.bf16.msra.mxu0 %v592_v13  ;;  %623 = vmatpush3.bf16.msra.mxu1 %v592_v13 }
  0x37   :  { %597 = vmatprep.subr.bf16.mxu0 %v596_v16  ;;  %616 = vmatprep.subr.bf16.mxu1 %v596_v16  ;;  %p688_p6 = pnand %p687_p5, %p681_p2 }
  0x3a   :  { %599 = vmatpush3.bf16.msra.mxu0 %v596_v16  ;;  %624 = vmatpush3.bf16.msra.mxu1 %v596_v16 }
  0x3b   :  { %601 = vmatprep.subr.bf16.mxu0 %v600_v19  ;;  %617 = vmatprep.subr.bf16.mxu1 %v600_v19 }
  0x3e   :  { %603 = vmatpush3.bf16.msra.mxu0 %v600_v19  ;;  %625 = vmatpush3.bf16.msra.mxu1 %v600_v19 }
  0x3f   :  { %605 = vmatprep.subr.bf16.mxu0 %v604_v22  ;;  %618 = vmatprep.subr.bf16.mxu1 %v604_v22 }
  0x42   :  { %607 = vmatpush3.bf16.msra.mxu0 %v604_v22  ;;  %626 = vmatpush3.bf16.msra.mxu1 %v604_v22 }
  0x43   :  { %609 = vmatprep.subr.bf16.mxu0 %v608_v25  ;;  %619 = vmatprep.subr.bf16.mxu1 %v608_v25 }
  0x46   :  { %611 = vmatpush3.bf16.msra.mxu0 %v608_v25  ;;  %627 = vmatpush3.bf16.msra.mxu1 %v608_v25 }
  0x49   :  { %557 = vmatmul.mubr.f32.vlgmr.msra.gmra.mrb[0].mxu0 %v46_v26  ;;  %569 = vmatmul.mubr.f32.vlgmr.msra.gmra.mrb[0].mxu1 %v54_v27 }
  0x4a   :  { %559 = vmatprep.mubr.f32.mxu0 %v47_v28  ;;  %571 = vmatprep.mubr.f32.mxu1 %v55_v29 }
  0x4d   :  { %560 = vmatmul.mubr.f32.gmra.mrb[2].mxu0 %v48_v30  ;;  %572 = vmatmul.mubr.f32.gmra.mrb[2].mxu1 %v56_v31 }
  0x4e   :  { %562 = vmatprep.mubr.f32.mxu0 %v49_v32  ;;  %574 = vmatprep.mubr.f32.mxu1 %v57_v33 }
  0x51   :  { %563 = vmatmul.mubr.f32.gmra.mrb[4].mxu0 %v50_v34  ;;  %575 = vmatmul.mubr.f32.gmra.mrb[4].mxu1 %v58_v35 }
  0x52   :  { %565 = vmatprep.mubr.f32.mxu0 %v51_v36  ;;  %577 = vmatprep.mubr.f32.mxu1 %v59_v37 }
  0x55   :  { %566 = vmatmul.mubr.f32.gmra.mrb[6].mxu0 %v52_v38  ;;  %578 = vmatmul.mubr.f32.gmra.mrb[6].mxu1 %v60_v39 }
 0x11c   :  { %v558_v41 = vpop.f32.mrb[0].mxu0  ;;  %v570_v42 = vpop.f32.mrb[0].mxu1 }
 0x11d   :  { %v156_v43 = vadd.f32 %v558_v41, %v412_v40  ;;  %v196_v44 = vadd.f32 %v570_v42, %v412_v40  ;;  %v150_v45 = vpop.f32.mrb[1].mxu0  ;;  %v190_v46 = vpop.f32.mrb[1].mxu1 }
 0x11e   :  { %v151_v47 = vadd.f32 %v412_v40, %v150_v45  ;;  %v191_v48 = vadd.f32 %v412_v40, %v190_v46 }
 0x11f   :  { %343 = vrot.lane.b32.xlu1 %v196_v44, %s712_s15  ;;  %327 = vrot.lane.b32.xlu0 %v156_v43, %s712_s15 }
 0x120   :  { %v448_v49 = vpack.c.bf16 %v156_v43, %v151_v47  ;;  %v468_v50 = vpack.c.bf16 %v196_v44, %v191_v48  ;;  %v561_v51 = vpop.f32.mrb[2].mxu0  ;;  %v573_v52 = vpop.f32.mrb[2].mxu1 }
 0x121   :  { %v166_v53 = vadd.f32 %v561_v51, %v412_v40  ;;  %v160_v54 = vpop.f32.mrb[3].mxu0  ;;  %v206_v55 = vadd.f32 %v573_v52, %v412_v40  ;;  %v200_v56 = vpop.f32.mrb[3].mxu1 }
 0x122   :  { %449 = vst [vmem:[#allocation7] sm:$0xff] %v448_v49   ;;  %488 = vst [vmem:[#allocation7 + $0x20] sm:$0xff] %v468_v50   ;;  %v161_v57 = vadd.f32 %v412_v40, %v160_v54  ;;  %v201_v58 = vadd.f32 %v412_v40, %v200_v56 }
 0x123   :  { %331 = vrot.lane.b32.xlu1 %v166_v53, %s712_s15  ;;  %325 = vrot.lane.b32.xlu0 %v151_v47, %s712_s15 }
 0x124   :  { %v453_v59 = vpack.c.bf16 %v166_v53, %v161_v57  ;;  %v473_v60 = vpack.c.bf16 %v206_v55, %v201_v58  ;;  %v564_v61 = vpop.f32.mrb[4].mxu0  ;;  %v576_v62 = vpop.f32.mrb[4].mxu1 }
 0x125   :  { %v176_v63 = vadd.f32 %v564_v61, %v412_v40  ;;  %v170_v0 = vpop.f32.mrb[5].mxu0  ;;  %v216_v1 = vadd.f32 %v576_v62, %v412_v40  ;;  %v210_v2 = vpop.f32.mrb[5].mxu1 }
 0x126   :  { %485 = vst [vmem:[#allocation7 + $0x8] sm:$0xff] %v453_v59   ;;  %489 = vst [vmem:[#allocation7 + $0x28] sm:$0xff] %v473_v60   ;;  %v171_v3 = vadd.f32 %v412_v40, %v170_v0  ;;  %v211_v4 = vadd.f32 %v412_v40, %v210_v2 }
 0x127   :  { %347 = vrot.lane.b32.xlu1 %v206_v55, %s712_s15  ;;  %341 = vrot.lane.b32.xlu0 %v191_v48, %s712_s15 }
 0x128   :  { %v458_v5 = vpack.c.bf16 %v176_v63, %v171_v3  ;;  %v478_v6 = vpack.c.bf16 %v216_v1, %v211_v4  ;;  %v567_v7 = vpop.f32.mrb[6].mxu0  ;;  %v579_v8 = vpop.f32.mrb[6].mxu1 }
 0x129   :  { %v186_v9 = vadd.f32 %v567_v7, %v412_v40  ;;  %v180_v10 = vpop.f32.mrb[7].mxu0  ;;  %v226_v11 = vadd.f32 %v579_v8, %v412_v40  ;;  %v220_v12 = vpop.f32.mrb[7].mxu1 }
 0x12a   :  { %486 = vst [vmem:[#allocation7 + $0x10] sm:$0xff] %v458_v5   ;;  %490 = vst [vmem:[#allocation7 + $0x30] sm:$0xff] %v478_v6   ;;  %v181_v13 = vadd.f32 %v412_v40, %v180_v10  ;;  %v221_v14 = vadd.f32 %v412_v40, %v220_v12 }
 0x12b   :  { %329 = vrot.lane.b32.xlu1 %v161_v57, %s712_s15  ;;  %345 = vrot.lane.b32.xlu0 %v201_v58, %s712_s15 }
 0x12c   :  { %v463_v15 = vpack.c.bf16 %v186_v9, %v181_v13  ;;  %v483_v16 = vpack.c.bf16 %v226_v11, %v221_v14 }
 0x12e   :  { %487 = vst [vmem:[#allocation7 + $0x18] sm:$0xff] %v463_v15   ;;  %491 = vst [vmem:[#allocation7 + $0x38] sm:$0xff] %v483_v16  }
 0x12f   :  { %335 = vrot.lane.b32.xlu1 %v176_v63, %s712_s15  ;;  %333 = vrot.lane.b32.xlu0 %v171_v3, %s712_s15 }
 0x130   :  { %691 = shalt.err (!%p688_p6)
}
 0x131   :  { %s692_s20 = scalar_lea.hbm %s863_s3, 1024 }
 0x132   :  { %p693_p7 = scmp.ne.s32.totalorder %s863_s3, %s692_s20  ;;  %p696_p8 = scmp.lt.u32.totalorder %s692_s20, %s863_s3 }
 0x134   :  { %p698_p9 = pnand %p696_p8, %p693_p7 }
 0x136   :  { %701 = shalt.err (!%p698_p9)
}
 0x137   :  { %s714_s25 = smov 64   ;;  %s715_s26 = smov 4   ;;  %351 = vrot.lane.b32.xlu1 %v216_v1, %s712_s15  ;;  %349 = vrot.lane.b32.xlu0 %v211_v4, %s712_s15  ;;  %vm373_vm0 = vcmask 7168  }
 0x138   :  { %401 = dma.vmem_to_hbm [thread:$0]  %s396_s16, 1024, %s863_s3, [#allocation4], %s714_s25, %s714_s25, %s715_s26  }
 0x13b   :  { %339 = vrot.lane.b32.xlu1 %v186_v9, %s712_s15  ;;  %337 = vrot.lane.b32.xlu0 %v181_v13, %s712_s15 }
 0x13f   :  { %355 = vrot.lane.b32.xlu1 %v226_v11, %s712_s15  ;;  %353 = vrot.lane.b32.xlu0 %v221_v14, %s712_s15 }
 0x191   :  { %v344_v17 = vpop.permute.xlu1 %343  ;;  %v328_v18 = vpop.permute.xlu0 %327 }
 0x192   :  { %383 = vst.msk [vmem:[%s864_s4 + $0x48] sm:$0xff] %vm373_vm0, %v344_v17  ;;  %375 = vst.msk [vmem:[%s864_s4 + $0x8] sm:$0xff] %vm373_vm0, %v328_v18 }
 0x195   :  { %v332_v19 = vpop.permute.xlu1 %331  ;;  %v326_v20 = vpop.permute.xlu0 %325 }
 0x196   :  { %377 = vst.msk [vmem:[%s864_s4 + $0x18] sm:$0xff] %vm373_vm0, %v332_v19  ;;  %374 = vst.msk [vmem:[%s864_s4] sm:$0xff] %vm373_vm0, %v326_v20 }
 0x199   :  { %v348_v21 = vpop.permute.xlu1 %347  ;;  %v342_v22 = vpop.permute.xlu0 %341 }
 0x19a   :  { %385 = vst.msk [vmem:[%s864_s4 + $0x58] sm:$0xff] %vm373_vm0, %v348_v21  ;;  %382 = vst.msk [vmem:[%s864_s4 + $0x40] sm:$0xff] %vm373_vm0, %v342_v22 }
 0x19d   :  { %v330_v23 = vpop.permute.xlu1 %329  ;;  %v346_v24 = vpop.permute.xlu0 %345 }
 0x19e   :  { %376 = vst.msk [vmem:[%s864_s4 + $0x10] sm:$0xff] %vm373_vm0, %v330_v23  ;;  %384 = vst.msk [vmem:[%s864_s4 + $0x50] sm:$0xff] %vm373_vm0, %v346_v24 }
 0x1a1   :  { %v336_v25 = vpop.permute.xlu1 %335  ;;  %v334_v26 = vpop.permute.xlu0 %333 }
 0x1a2   :  { %379 = vst.msk [vmem:[%s864_s4 + $0x28] sm:$0xff] %vm373_vm0, %v336_v25  ;;  %378 = vst.msk [vmem:[%s864_s4 + $0x20] sm:$0xff] %vm373_vm0, %v334_v26 }
 0x1a9   :  { %v352_v27 = vpop.permute.xlu1 %351  ;;  %v350_v28 = vpop.permute.xlu0 %349 }
 0x1aa   :  { %387 = vst.msk [vmem:[%s864_s4 + $0x68] sm:$0xff] %vm373_vm0, %v352_v27  ;;  %386 = vst.msk [vmem:[%s864_s4 + $0x60] sm:$0xff] %vm373_vm0, %v350_v28 }
 0x1ad   :  { %v340_v29 = vpop.permute.xlu1 %339  ;;  %v338_v30 = vpop.permute.xlu0 %337 }
 0x1ae   :  { %381 = vst.msk [vmem:[%s864_s4 + $0x38] sm:$0xff] %vm373_vm0, %v340_v29  ;;  %380 = vst.msk [vmem:[%s864_s4 + $0x30] sm:$0xff] %vm373_vm0, %v338_v30 }
 0x1b1   :  { %v356_v31 = vpop.permute.xlu1 %355  ;;  %v354_v32 = vpop.permute.xlu0 %353 }
 0x1b2   :  { %389 = vst.msk [vmem:[%s864_s4 + $0x78] sm:$0xff] %vm373_vm0, %v356_v31  ;;  %388 = vst.msk [vmem:[%s864_s4 + $0x70] sm:$0xff] %vm373_vm0, %v354_v32 }
 0x1b3   :  { %706 = dma.done.wait [#allocation4], 1024  }
 0x1b4   :  { %707 = vsyncadd [#allocation4], 4294966272 }
 0x1b5   :  { %409 = vsyncpa [#allocation3], 1 }
 0x1b6   :  { %410 = vsyncpa [#allocation6], 1 }
 0x1b7   :  { %411 = vsyncpa [#allocation4], 1 }

</bundles_post_ra>
